<compile_context>
chip_gen: v6e
topology: v6e:2x2x1
jax: 0.10.0
libtpu: 0.0.40
codegen_flags: <defaults>
</compile_context>

<pallas_src>
import numpy as np
import jax
import jax.numpy as jnp
from jax.experimental import pallas as pl
from jax.experimental.pallas import tpu as pltpu


def _round_up(x, m):
    return -(-x // m) * m


def _tile_bytes(shape, itemsize=4):
    """VMEM footprint of a 2-D f32/int32 block, rounded up to (8, 128) tiles."""
    r, c = shape
    return _round_up(max(int(r), 1), 8) * _round_up(max(int(c), 1), 128) * itemsize


def _device_vmem_bytes():
    """Physical VMEM of the local TPU; falls back to the v7x per-core 64 MiB."""
    try:
        info = pltpu.get_tpu_info()
        return int(getattr(info, "vmem_capacity_bytes", 64 * 1024 * 1024))
    except Exception:
        return 64 * 1024 * 1024


def make_dense_tbe_kernel(feature_table_map, feat_dims, col_offsets, table_rows,
                          n_tables, batch_tile, bag_len, total_d_pad):
    """Builds the kernel for a fixed (static) TBE configuration."""
    n_feat = len(feature_table_map)

    def kernel(idx_ref, *rest):
        table_refs = rest[:n_tables]             # deduplicated tables, VMEM-resident
        out_ref = rest[n_tables]                 # (TB, total_d_pad) f32 output block

        idx = idx_ref[...]                       # (TB, n_feat*L) int32, this batch block
        packed = jnp.zeros((batch_tile, total_d_pad), jnp.float32)

        for f in range(n_feat):                  # static unroll over features
            t = feature_table_map[f]
            w = table_refs[t][...]               # (rows_t, d_t) f32 (shared tables reuse one ref)
            rows = table_rows[t]
            d = feat_dims[f]

            # Tree-reduced one-hot accumulation over bag positions -> per-bag row counts.
            # Padded slots hold the out-of-range sentinel index == rows, so their one-hot
            # row is all zero (empty bags come out zero, no mask / sentinel row needed),
            # and repeated rows inside a bag just raise the count (dedup for free).
            row_ids = jax.lax.broadcasted_iota(jnp.int32, (batch_tile, rows), 1)
            onehots = [
                jnp.where(idx[:, f * bag_len + l:f * bag_len + l + 1] == row_ids, 1.0, 0.0)
                for l in range(bag_len)
            ]
            while len(onehots) > 1:              # pairwise (log-depth) reduction
                nxt = [onehots[i] + onehots[i + 1] for i in range(0, len(onehots) - 1, 2)]
                if len(onehots) % 2:
                    nxt.append(onehots[-1])
                onehots = nxt
            counts = onehots[0]                  # (TB, rows) f32

            # SUM pooling == counts @ table on the MXU (table already resident in VMEM).
            pooled = jnp.dot(counts, w, preferred_element_type=jnp.float32)   # (TB, d)

            # Place this feature at its fbgemm column offset via a one-hot placement
            # matmul so the final out_ref store is a single full-width (lane-dense,
            # unmasked) store instead of per-feature sub-128-lane masked column stores.
            off = col_offsets[f]
            src = jax.lax.broadcasted_iota(jnp.int32, (d, total_d_pad), 0)
            dst = jax.lax.broadcasted_iota(jnp.int32, (d, total_d_pad), 1)
            place = jnp.where(dst == src + off, 1.0, 0.0)                     # (d, Dpad)
            packed = packed + jnp.dot(pooled, place, preferred_element_type=jnp.float32)

        out_ref[...] = packed                    # one lane-dense store per batch block

    return kernel


def dense_tbe_forward(idx, tables, feature_table_map, feat_dims, batch, bag_len,
                      batch_tile=None):
    """Forward pass (SUM pooling, FP32 weights, FP32 output).

    idx:    (B_pad, n_feat*bag_len) int32; column f*bag_len + l; padded slots hold the
            out-of-range sentinel index == num_rows(table of feature f).
    tables: list of deduplicated (rows_t, dim_t) f32 embedding tables.
    """
    n_feat = len(feature_table_map)
    n_tables = len(tables)
    b_pad = idx.shape[0]
    assert b_pad % 8 == 0 and idx.shape[1] == n_feat * bag_len

    col_offsets = [0]
    for d in feat_dims:
        col_offsets.append(col_offsets[-1] + d)
    total_d = col_offsets[-1]
    total_d_pad = _round_up(total_d, 128)                    # lane-dense output slab
    table_rows = tuple(int(t.shape[0]) for t in tables)

    # ---- VMEM budgeting: derive the limit / batch tile from real block sizes and the
    # ---- device's VMEM (64 MiB on v7x, 128 MiB on v5e/v6e), not a hard-coded cap. ----
    resident_table_bytes = sum(_tile_bytes(t.shape) for t in tables)

    def est_bytes(tb):
        return (2 * _tile_bytes((tb, n_feat * bag_len))      # idx blocks (double-buffered)
                + 2 * _tile_bytes((tb, total_d_pad))         # out blocks (double-buffered)
                + 2 * resident_table_bytes                   # resident tables
                + 2 * sum(_tile_bytes((tb, r)) for r in table_rows))  # counts temporaries

    device_vmem = _device_vmem_bytes()
    vmem_budget = device_vmem // 2                           # leave pipelining headroom
    if batch_tile is None:
        batch_tile = 8
        while (batch_tile < b_pad and b_pad % (2 * batch_tile) == 0
               and est_bytes(2 * batch_tile) <= vmem_budget):
            batch_tile *= 2
    assert b_pad % batch_tile == 0
    vmem_limit = int(min(device_vmem,
                         max(2 * est_bytes(batch_tile) + (8 << 20), 32 << 20)))

    kernel = make_dense_tbe_kernel(tuple(feature_table_map), tuple(feat_dims),
                                   tuple(col_offsets), table_rows, n_tables,
                                   batch_tile, bag_len, total_d_pad)

    in_specs = [pl.BlockSpec((batch_tile, n_feat * bag_len), lambda i: (i, 0))]
    # Whole (small) tables: constant block index -> DMA'd into VMEM once and kept
    # resident across all batch blocks.
    # TODO(synk): tables too large for the VMEM budget should stay in HBM
    # (memory_space=pl.ANY) with a per-row make_async_copy gather path instead.
    in_specs += [pl.BlockSpec(tables[t].shape, lambda i: (0, 0)) for t in range(n_tables)]

    out_pad = pl.pallas_call(
        kernel,
        out_shape=jax.ShapeDtypeStruct((b_pad, total_d_pad), jnp.float32),
        grid=(b_pad // batch_tile,),
        in_specs=in_specs,
        out_specs=pl.BlockSpec((batch_tile, total_d_pad), lambda i: (i, 0)),
        compiler_params=pltpu.CompilerParams(
            dimension_semantics=("parallel",),   # batch blocks shard across v7x's 2 TCs
            vmem_limit_bytes=vmem_limit),
    )(idx, *tables)

    return out_pad[:batch, :total_d]


if __name__ == "__main__":
    # ----- module configuration (synthetic, deterministic) -----
    embedding_specs = [(100, 32), (50, 64), (80, 16)]        # (rows, dim) per table
    feature_table_map = [0, 1, 2, 1]                          # table 1 shared by 2 features
    rows, dims = zip(*embedding_specs)
    T_ = len(embedding_specs)
    T = len(feature_table_map)
    dims_per_feature = [dims[t] for t in feature_table_map]
    D_offsets = [0]
    for d in dims_per_feature:
        D_offsets.append(D_offsets[-1] + d)
    total_D = D_offsets[-1]

    weights_offsets = [0]
    for r, d in embedding_specs:
        weights_offsets.append(weights_offsets[-1] + r * d)

    B = 12          # batch size
    L_max = 8       # max bag length
    B_pad = _round_up(B, 8)

    # ----- deterministic parameter init (matches torch.randn flat weights) -----
    key = jax.random.PRNGKey(0)
    k_w, k_len, k_idx = jax.random.split(key, 3)
    weights_flat = jax.random.normal(k_w, (weights_offsets[-1],), dtype=jnp.float32)
    weights_np = np.asarray(weights_flat)

    # ----- deterministic synthetic bags (fbgemm CSR indices/offsets) -----
    bag_lens = np.asarray(
        jax.random.randint(k_len, (T * B,), 0, L_max + 1), dtype=np.int64)
    offsets = np.zeros(T * B + 1, dtype=np.int64)
    offsets[1:] = np.cumsum(bag_lens)
    n_indices = int(offsets[-1])
    max_rows_per_bag = np.repeat(
        np.asarray([rows[t] for t in feature_table_map]), B)
    raw = np.asarray(jax.random.randint(k_idx, (n_indices,), 0, 1 << 30))
    indices = np.zeros(n_indices, dtype=np.int64)
    for fb in range(T * B):
        s, e = int(offsets[fb]), int(offsets[fb + 1])
        indices[s:e] = raw[s:e] % max_rows_per_bag[fb]

    # ----- glue: deduplicated tables at their natural dims (no sentinel row needed) -----
    tables = []
    for t in range(T_):
        r, d = embedding_specs[t]
        tables.append(jnp.asarray(
            weights_np[weights_offsets[t]:weights_offsets[t + 1]].reshape(r, d)))

    # ----- glue: densify bags into (B_pad, T*L) indices; padding slots get the
    # ----- out-of-range sentinel index (== rows of that feature's table) -----
    idx_np = np.empty((B_pad, T * L_max), dtype=np.int32)
    for f in range(T):
        t = feature_table_map[f]
        idx_np[:, f * L_max:(f + 1) * L_max] = rows[t]        # sentinel -> zero contribution
        for b in range(B):
            s, e = int(offsets[f * B + b]), int(offsets[f * B + b + 1])
            idx_np[b, f * L_max:f * L_max + (e - s)] = indices[s:e]
    idx = jnp.asarray(idx_np)

    # ----- run the Pallas kernel (batch_tile=8 to exercise the multi-block batch grid) -----
    out = dense_tbe_forward(idx, tables, feature_table_map, dims_per_feature,
                            B, L_max, batch_tile=8)
    out = jax.block_until_ready(out)

    # ----- pure-numpy reference (embedding bag, SUM pooling) -----
    expected = np.zeros((B, total_D), dtype=np.float32)
    for f in range(T):
        t = feature_table_map[f]
        r, d = embedding_specs[t]
        table = weights_np[weights_offsets[t]:weights_offsets[t + 1]].reshape(r, d)
        for b in range(B):
            s, e = int(offsets[f * B + b]), int(offsets[f * B + b + 1])
            if e > s:
                expected[b, D_offsets[f]:D_offsets[f + 1]] = table[indices[s:e]].sum(0)

    # f32 multi-pass MXU matmul + different accumulation order vs. the serial reference
    # sum -> keep an fp32-class (but not bit-exact) tolerance.
    np.testing.assert_allclose(np.asarray(out), expected, rtol=1e-4, atol=1e-4)
    # TODO(synk): per_sample_weights / MEAN / NONE pooling modes not implemented
    # (module forward default is SUM, FP32 weights, FP32 output).
    print("KERNEL_OK")
</pallas_src>

<mosaic_0001>
module attributes {stable_mosaic.version = 11 : i64} {
  func.func @kernel(%arg0: i32, %arg1: memref<8x32xi32, #tpu.memory_space<vmem>>, %arg2: memref<100x32xf32, #tpu.memory_space<vmem>>, %arg3: memref<50x64xf32, #tpu.memory_space<vmem>>, %arg4: memref<80x16xf32, #tpu.memory_space<vmem>>, %arg5: memref<8x256xf32, #tpu.memory_space<vmem>>) attributes {dimension_semantics = [#tpu.dimension_semantics<parallel>], iteration_bounds = array<i64: 2>, scalar_prefetch = 0 : i64, scratch_operands = 0 : i64, tpu.core_type = #tpu.core_type<tc>, window_params = [{transform_indices = @transform_0, window_bounds = array<i64: 8, 32>}, {pipeline_mode = #tpu.pipeline_mode<synchronous>, transform_indices = @transform_1, window_bounds = array<i64: 100, 32>}, {pipeline_mode = #tpu.pipeline_mode<synchronous>, transform_indices = @transform_2, window_bounds = array<i64: 50, 64>}, {pipeline_mode = #tpu.pipeline_mode<synchronous>, transform_indices = @transform_3, window_bounds = array<i64: 80, 16>}, {transform_indices = @transform_4, window_bounds = array<i64: 8, 256>}]} {
    %c0 = arith.constant 0 : index
    %c0_0 = arith.constant 0 : index
    %0 = vector.load %arg1[%c0, %c0_0] : memref<8x32xi32, #tpu.memory_space<vmem>>, vector<8x32xi32>
    %cst = arith.constant 0.000000e+00 : f32
    %1 = vector.broadcast %cst : f32 to vector<8x256xf32>
    %c0_1 = arith.constant 0 : index
    %c0_2 = arith.constant 0 : index
    %2 = vector.load %arg2[%c0_1, %c0_2] : memref<100x32xf32, #tpu.memory_space<vmem>>, vector<100x32xf32>
    %3 = tpu.iota {dimensions = array<i32: 1>} : vector<8x100xi32>
    %4 = vector.extract_strided_slice %0 {offsets = [0, 0], sizes = [8, 1], strides = [1, 1]} : vector<8x32xi32> to vector<8x1xi32>
    %5 = vector.broadcast %4 : vector<8x1xi32> to vector<8x100xi32>
    %6 = arith.cmpi eq, %5, %3 : vector<8x100xi32>
    %cst_3 = arith.constant 1.000000e+00 : f32
    %cst_4 = arith.constant 0.000000e+00 : f32
    %7 = vector.broadcast %cst_3 : f32 to vector<8x100xf32>
    %8 = vector.broadcast %cst_4 : f32 to vector<8x100xf32>
    %9 = arith.select %6, %7, %8 : vector<8x100xi1>, vector<8x100xf32>
    %10 = vector.extract_strided_slice %0 {offsets = [0, 1], sizes = [8, 1], strides = [1, 1]} : vector<8x32xi32> to vector<8x1xi32>
    %11 = vector.broadcast %10 : vector<8x1xi32> to vector<8x100xi32>
    %12 = arith.cmpi eq, %11, %3 : vector<8x100xi32>
    %cst_5 = arith.constant 1.000000e+00 : f32
    %cst_6 = arith.constant 0.000000e+00 : f32
    %13 = vector.broadcast %cst_5 : f32 to vector<8x100xf32>
    %14 = vector.broadcast %cst_6 : f32 to vector<8x100xf32>
    %15 = arith.select %12, %13, %14 : vector<8x100xi1>, vector<8x100xf32>
    %16 = vector.extract_strided_slice %0 {offsets = [0, 2], sizes = [8, 1], strides = [1, 1]} : vector<8x32xi32> to vector<8x1xi32>
    %17 = vector.broadcast %16 : vector<8x1xi32> to vector<8x100xi32>
    %18 = arith.cmpi eq, %17, %3 : vector<8x100xi32>
    %cst_7 = arith.constant 1.000000e+00 : f32
    %cst_8 = arith.constant 0.000000e+00 : f32
    %19 = vector.broadcast %cst_7 : f32 to vector<8x100xf32>
    %20 = vector.broadcast %cst_8 : f32 to vector<8x100xf32>
    %21 = arith.select %18, %19, %20 : vector<8x100xi1>, vector<8x100xf32>
    %22 = vector.extract_strided_slice %0 {offsets = [0, 3], sizes = [8, 1], strides = [1, 1]} : vector<8x32xi32> to vector<8x1xi32>
    %23 = vector.broadcast %22 : vector<8x1xi32> to vector<8x100xi32>
    %24 = arith.cmpi eq, %23, %3 : vector<8x100xi32>
    %cst_9 = arith.constant 1.000000e+00 : f32
    %cst_10 = arith.constant 0.000000e+00 : f32
    %25 = vector.broadcast %cst_9 : f32 to vector<8x100xf32>
    %26 = vector.broadcast %cst_10 : f32 to vector<8x100xf32>
    %27 = arith.select %24, %25, %26 : vector<8x100xi1>, vector<8x100xf32>
    %28 = vector.extract_strided_slice %0 {offsets = [0, 4], sizes = [8, 1], strides = [1, 1]} : vector<8x32xi32> to vector<8x1xi32>
    %29 = vector.broadcast %28 : vector<8x1xi32> to vector<8x100xi32>
    %30 = arith.cmpi eq, %29, %3 : vector<8x100xi32>
    %cst_11 = arith.constant 1.000000e+00 : f32
    %cst_12 = arith.constant 0.000000e+00 : f32
    %31 = vector.broadcast %cst_11 : f32 to vector<8x100xf32>
    %32 = vector.broadcast %cst_12 : f32 to vector<8x100xf32>
    %33 = arith.select %30, %31, %32 : vector<8x100xi1>, vector<8x100xf32>
    %34 = vector.extract_strided_slice %0 {offsets = [0, 5], sizes = [8, 1], strides = [1, 1]} : vector<8x32xi32> to vector<8x1xi32>
    %35 = vector.broadcast %34 : vector<8x1xi32> to vector<8x100xi32>
    %36 = arith.cmpi eq, %35, %3 : vector<8x100xi32>
    %cst_13 = arith.constant 1.000000e+00 : f32
    %cst_14 = arith.constant 0.000000e+00 : f32
    %37 = vector.broadcast %cst_13 : f32 to vector<8x100xf32>
    %38 = vector.broadcast %cst_14 : f32 to vector<8x100xf32>
    %39 = arith.select %36, %37, %38 : vector<8x100xi1>, vector<8x100xf32>
    %40 = vector.extract_strided_slice %0 {offsets = [0, 6], sizes = [8, 1], strides = [1, 1]} : vector<8x32xi32> to vector<8x1xi32>
    %41 = vector.broadcast %40 : vector<8x1xi32> to vector<8x100xi32>
    %42 = arith.cmpi eq, %41, %3 : vector<8x100xi32>
    %cst_15 = arith.constant 1.000000e+00 : f32
    %cst_16 = arith.constant 0.000000e+00 : f32
    %43 = vector.broadcast %cst_15 : f32 to vector<8x100xf32>
    %44 = vector.broadcast %cst_16 : f32 to vector<8x100xf32>
    %45 = arith.select %42, %43, %44 : vector<8x100xi1>, vector<8x100xf32>
    %46 = vector.extract_strided_slice %0 {offsets = [0, 7], sizes = [8, 1], strides = [1, 1]} : vector<8x32xi32> to vector<8x1xi32>
    %47 = vector.broadcast %46 : vector<8x1xi32> to vector<8x100xi32>
    %48 = arith.cmpi eq, %47, %3 : vector<8x100xi32>
    %cst_17 = arith.constant 1.000000e+00 : f32
    %cst_18 = arith.constant 0.000000e+00 : f32
    %49 = vector.broadcast %cst_17 : f32 to vector<8x100xf32>
    %50 = vector.broadcast %cst_18 : f32 to vector<8x100xf32>
    %51 = arith.select %48, %49, %50 : vector<8x100xi1>, vector<8x100xf32>
    %52 = arith.addf %9, %15 : vector<8x100xf32>
    %53 = arith.addf %21, %27 : vector<8x100xf32>
    %54 = arith.addf %33, %39 : vector<8x100xf32>
    %55 = arith.addf %45, %51 : vector<8x100xf32>
    %56 = arith.addf %52, %53 : vector<8x100xf32>
    %57 = arith.addf %54, %55 : vector<8x100xf32>
    %58 = arith.addf %56, %57 : vector<8x100xf32>
    %cst_19 = arith.constant dense<0.000000e+00> : vector<8x32xf32>
    %59 = tpu.matmul %58, %2, %cst_19 {dimension_numbers = #tpu.dot_dimension_numbers<[1], [0], [0], [1], [0, 0, 1, 1], [], []>} : vector<8x100xf32>, vector<100x32xf32>, vector<8x32xf32> -> vector<8x32xf32>
    %60 = tpu.iota {dimensions = array<i32: 0>} : vector<32x256xi32>
    %61 = tpu.iota {dimensions = array<i32: 1>} : vector<32x256xi32>
    %c0_i32 = arith.constant 0 : i32
    %62 = vector.broadcast %c0_i32 : i32 to vector<32x256xi32>
    %63 = arith.addi %60, %62 : vector<32x256xi32>
    %64 = arith.cmpi eq, %61, %63 : vector<32x256xi32>
    %cst_20 = arith.constant 1.000000e+00 : f32
    %cst_21 = arith.constant 0.000000e+00 : f32
    %65 = vector.broadcast %cst_20 : f32 to vector<32x256xf32>
    %66 = vector.broadcast %cst_21 : f32 to vector<32x256xf32>
    %67 = arith.select %64, %65, %66 : vector<32x256xi1>, vector<32x256xf32>
    %cst_22 = arith.constant dense<0.000000e+00> : vector<8x256xf32>
    %68 = tpu.matmul %59, %67, %cst_22 {dimension_numbers = #tpu.dot_dimension_numbers<[1], [0], [0], [1], [0, 0, 1, 1], [], []>} : vector<8x32xf32>, vector<32x256xf32>, vector<8x256xf32> -> vector<8x256xf32>
    %69 = arith.addf %1, %68 : vector<8x256xf32>
    %c0_23 = arith.constant 0 : index
    %c0_24 = arith.constant 0 : index
    %70 = vector.load %arg3[%c0_23, %c0_24] : memref<50x64xf32, #tpu.memory_space<vmem>>, vector<50x64xf32>
    %71 = tpu.iota {dimensions = array<i32: 1>} : vector<8x50xi32>
    %72 = vector.extract_strided_slice %0 {offsets = [0, 8], sizes = [8, 1], strides = [1, 1]} : vector<8x32xi32> to vector<8x1xi32>
    %73 = vector.broadcast %72 : vector<8x1xi32> to vector<8x50xi32>
    %74 = arith.cmpi eq, %73, %71 : vector<8x50xi32>
    %cst_25 = arith.constant 1.000000e+00 : f32
    %cst_26 = arith.constant 0.000000e+00 : f32
    %75 = vector.broadcast %cst_25 : f32 to vector<8x50xf32>
    %76 = vector.broadcast %cst_26 : f32 to vector<8x50xf32>
    %77 = arith.select %74, %75, %76 : vector<8x50xi1>, vector<8x50xf32>
    %78 = vector.extract_strided_slice %0 {offsets = [0, 9], sizes = [8, 1], strides = [1, 1]} : vector<8x32xi32> to vector<8x1xi32>
    %79 = vector.broadcast %78 : vector<8x1xi32> to vector<8x50xi32>
    %80 = arith.cmpi eq, %79, %71 : vector<8x50xi32>
    %cst_27 = arith.constant 1.000000e+00 : f32
    %cst_28 = arith.constant 0.000000e+00 : f32
    %81 = vector.broadcast %cst_27 : f32 to vector<8x50xf32>
    %82 = vector.broadcast %cst_28 : f32 to vector<8x50xf32>
    %83 = arith.select %80, %81, %82 : vector<8x50xi1>, vector<8x50xf32>
    %84 = vector.extract_strided_slice %0 {offsets = [0, 10], sizes = [8, 1], strides = [1, 1]} : vector<8x32xi32> to vector<8x1xi32>
    %85 = vector.broadcast %84 : vector<8x1xi32> to vector<8x50xi32>
    %86 = arith.cmpi eq, %85, %71 : vector<8x50xi32>
    %cst_29 = arith.constant 1.000000e+00 : f32
    %cst_30 = arith.constant 0.000000e+00 : f32
    %87 = vector.broadcast %cst_29 : f32 to vector<8x50xf32>
    %88 = vector.broadcast %cst_30 : f32 to vector<8x50xf32>
    %89 = arith.select %86, %87, %88 : vector<8x50xi1>, vector<8x50xf32>
    %90 = vector.extract_strided_slice %0 {offsets = [0, 11], sizes = [8, 1], strides = [1, 1]} : vector<8x32xi32> to vector<8x1xi32>
    %91 = vector.broadcast %90 : vector<8x1xi32> to vector<8x50xi32>
    %92 = arith.cmpi eq, %91, %71 : vector<8x50xi32>
    %cst_31 = arith.constant 1.000000e+00 : f32
    %cst_32 = arith.constant 0.000000e+00 : f32
    %93 = vector.broadcast %cst_31 : f32 to vector<8x50xf32>
    %94 = vector.broadcast %cst_32 : f32 to vector<8x50xf32>
    %95 = arith.select %92, %93, %94 : vector<8x50xi1>, vector<8x50xf32>
    %96 = vector.extract_strided_slice %0 {offsets = [0, 12], sizes = [8, 1], strides = [1, 1]} : vector<8x32xi32> to vector<8x1xi32>
    %97 = vector.broadcast %96 : vector<8x1xi32> to vector<8x50xi32>
    %98 = arith.cmpi eq, %97, %71 : vector<8x50xi32>
    %cst_33 = arith.constant 1.000000e+00 : f32
    %cst_34 = arith.constant 0.000000e+00 : f32
    %99 = vector.broadcast %cst_33 : f32 to vector<8x50xf32>
    %100 = vector.broadcast %cst_34 : f32 to vector<8x50xf32>
    %101 = arith.select %98, %99, %100 : vector<8x50xi1>, vector<8x50xf32>
    %102 = vector.extract_strided_slice %0 {offsets = [0, 13], sizes = [8, 1], strides = [1, 1]} : vector<8x32xi32> to vector<8x1xi32>
    %103 = vector.broadcast %102 : vector<8x1xi32> to vector<8x50xi32>
    %104 = arith.cmpi eq, %103, %71 : vector<8x50xi32>
    %cst_35 = arith.constant 1.000000e+00 : f32
    %cst_36 = arith.constant 0.000000e+00 : f32
    %105 = vector.broadcast %cst_35 : f32 to vector<8x50xf32>
    %106 = vector.broadcast %cst_36 : f32 to vector<8x50xf32>
    %107 = arith.select %104, %105, %106 : vector<8x50xi1>, vector<8x50xf32>
    %108 = vector.extract_strided_slice %0 {offsets = [0, 14], sizes = [8, 1], strides = [1, 1]} : vector<8x32xi32> to vector<8x1xi32>
    %109 = vector.broadcast %108 : vector<8x1xi32> to vector<8x50xi32>
    %110 = arith.cmpi eq, %109, %71 : vector<8x50xi32>
    %cst_37 = arith.constant 1.000000e+00 : f32
    %cst_38 = arith.constant 0.000000e+00 : f32
    %111 = vector.broadcast %cst_37 : f32 to vector<8x50xf32>
    %112 = vector.broadcast %cst_38 : f32 to vector<8x50xf32>
    %113 = arith.select %110, %111, %112 : vector<8x50xi1>, vector<8x50xf32>
    %114 = vector.extract_strided_slice %0 {offsets = [0, 15], sizes = [8, 1], strides = [1, 1]} : vector<8x32xi32> to vector<8x1xi32>
    %115 = vector.broadcast %114 : vector<8x1xi32> to vector<8x50xi32>
    %116 = arith.cmpi eq, %115, %71 : vector<8x50xi32>
    %cst_39 = arith.constant 1.000000e+00 : f32
    %cst_40 = arith.constant 0.000000e+00 : f32
    %117 = vector.broadcast %cst_39 : f32 to vector<8x50xf32>
    %118 = vector.broadcast %cst_40 : f32 to vector<8x50xf32>
    %119 = arith.select %116, %117, %118 : vector<8x50xi1>, vector<8x50xf32>
    %120 = arith.addf %77, %83 : vector<8x50xf32>
    %121 = arith.addf %89, %95 : vector<8x50xf32>
    %122 = arith.addf %101, %107 : vector<8x50xf32>
    %123 = arith.addf %113, %119 : vector<8x50xf32>
    %124 = arith.addf %120, %121 : vector<8x50xf32>
    %125 = arith.addf %122, %123 : vector<8x50xf32>
    %126 = arith.addf %124, %125 : vector<8x50xf32>
    %cst_41 = arith.constant dense<0.000000e+00> : vector<8x64xf32>
    %127 = tpu.matmul %126, %70, %cst_41 {dimension_numbers = #tpu.dot_dimension_numbers<[1], [0], [0], [1], [0, 0, 1, 1], [], []>} : vector<8x50xf32>, vector<50x64xf32>, vector<8x64xf32> -> vector<8x64xf32>
    %128 = tpu.iota {dimensions = array<i32: 0>} : vector<64x256xi32>
    %129 = tpu.iota {dimensions = array<i32: 1>} : vector<64x256xi32>
    %c32_i32 = arith.constant 32 : i32
    %130 = vector.broadcast %c32_i32 : i32 to vector<64x256xi32>
    %131 = arith.addi %128, %130 : vector<64x256xi32>
    %132 = arith.cmpi eq, %129, %131 : vector<64x256xi32>
    %cst_42 = arith.constant 1.000000e+00 : f32
    %cst_43 = arith.constant 0.000000e+00 : f32
    %133 = vector.broadcast %cst_42 : f32 to vector<64x256xf32>
    %134 = vector.broadcast %cst_43 : f32 to vector<64x256xf32>
    %135 = arith.select %132, %133, %134 : vector<64x256xi1>, vector<64x256xf32>
    %cst_44 = arith.constant dense<0.000000e+00> : vector<8x256xf32>
    %136 = tpu.matmul %127, %135, %cst_44 {dimension_numbers = #tpu.dot_dimension_numbers<[1], [0], [0], [1], [0, 0, 1, 1], [], []>} : vector<8x64xf32>, vector<64x256xf32>, vector<8x256xf32> -> vector<8x256xf32>
    %137 = arith.addf %69, %136 : vector<8x256xf32>
    %c0_45 = arith.constant 0 : index
    %c0_46 = arith.constant 0 : index
    %138 = vector.load %arg4[%c0_45, %c0_46] : memref<80x16xf32, #tpu.memory_space<vmem>>, vector<80x16xf32>
    %139 = tpu.iota {dimensions = array<i32: 1>} : vector<8x80xi32>
    %140 = vector.extract_strided_slice %0 {offsets = [0, 16], sizes = [8, 1], strides = [1, 1]} : vector<8x32xi32> to vector<8x1xi32>
    %141 = vector.broadcast %140 : vector<8x1xi32> to vector<8x80xi32>
    %142 = arith.cmpi eq, %141, %139 : vector<8x80xi32>
    %cst_47 = arith.constant 1.000000e+00 : f32
    %cst_48 = arith.constant 0.000000e+00 : f32
    %143 = vector.broadcast %cst_47 : f32 to vector<8x80xf32>
    %144 = vector.broadcast %cst_48 : f32 to vector<8x80xf32>
    %145 = arith.select %142, %143, %144 : vector<8x80xi1>, vector<8x80xf32>
    %146 = vector.extract_strided_slice %0 {offsets = [0, 17], sizes = [8, 1], strides = [1, 1]} : vector<8x32xi32> to vector<8x1xi32>
    %147 = vector.broadcast %146 : vector<8x1xi32> to vector<8x80xi32>
    %148 = arith.cmpi eq, %147, %139 : vector<8x80xi32>
    %cst_49 = arith.constant 1.000000e+00 : f32
    %cst_50 = arith.constant 0.000000e+00 : f32
    %149 = vector.broadcast %cst_49 : f32 to vector<8x80xf32>
    %150 = vector.broadcast %cst_50 : f32 to vector<8x80xf32>
    %151 = arith.select %148, %149, %150 : vector<8x80xi1>, vector<8x80xf32>
    %152 = vector.extract_strided_slice %0 {offsets = [0, 18], sizes = [8, 1], strides = [1, 1]} : vector<8x32xi32> to vector<8x1xi32>
    %153 = vector.broadcast %152 : vector<8x1xi32> to vector<8x80xi32>
    %154 = arith.cmpi eq, %153, %139 : vector<8x80xi32>
    %cst_51 = arith.constant 1.000000e+00 : f32
    %cst_52 = arith.constant 0.000000e+00 : f32
    %155 = vector.broadcast %cst_51 : f32 to vector<8x80xf32>
    %156 = vector.broadcast %cst_52 : f32 to vector<8x80xf32>
    %157 = arith.select %154, %155, %156 : vector<8x80xi1>, vector<8x80xf32>
    %158 = vector.extract_strided_slice %0 {offsets = [0, 19], sizes = [8, 1], strides = [1, 1]} : vector<8x32xi32> to vector<8x1xi32>
    %159 = vector.broadcast %158 : vector<8x1xi32> to vector<8x80xi32>
    %160 = arith.cmpi eq, %159, %139 : vector<8x80xi32>
    %cst_53 = arith.constant 1.000000e+00 : f32
    %cst_54 = arith.constant 0.000000e+00 : f32
    %161 = vector.broadcast %cst_53 : f32 to vector<8x80xf32>
    %162 = vector.broadcast %cst_54 : f32 to vector<8x80xf32>
    %163 = arith.select %160, %161, %162 : vector<8x80xi1>, vector<8x80xf32>
    %164 = vector.extract_strided_slice %0 {offsets = [0, 20], sizes = [8, 1], strides = [1, 1]} : vector<8x32xi32> to vector<8x1xi32>
    %165 = vector.broadcast %164 : vector<8x1xi32> to vector<8x80xi32>
    %166 = arith.cmpi eq, %165, %139 : vector<8x80xi32>
    %cst_55 = arith.constant 1.000000e+00 : f32
    %cst_56 = arith.constant 0.000000e+00 : f32
    %167 = vector.broadcast %cst_55 : f32 to vector<8x80xf32>
    %168 = vector.broadcast %cst_56 : f32 to vector<8x80xf32>
    %169 = arith.select %166, %167, %168 : vector<8x80xi1>, vector<8x80xf32>
    %170 = vector.extract_strided_slice %0 {offsets = [0, 21], sizes = [8, 1], strides = [1, 1]} : vector<8x32xi32> to vector<8x1xi32>
    %171 = vector.broadcast %170 : vector<8x1xi32> to vector<8x80xi32>
    %172 = arith.cmpi eq, %171, %139 : vector<8x80xi32>
    %cst_57 = arith.constant 1.000000e+00 : f32
    %cst_58 = arith.constant 0.000000e+00 : f32
    %173 = vector.broadcast %cst_57 : f32 to vector<8x80xf32>
    %174 = vector.broadcast %cst_58 : f32 to vector<8x80xf32>
    %175 = arith.select %172, %173, %174 : vector<8x80xi1>, vector<8x80xf32>
    %176 = vector.extract_strided_slice %0 {offsets = [0, 22], sizes = [8, 1], strides = [1, 1]} : vector<8x32xi32> to vector<8x1xi32>
    %177 = vector.broadcast %176 : vector<8x1xi32> to vector<8x80xi32>
    %178 = arith.cmpi eq, %177, %139 : vector<8x80xi32>
    %cst_59 = arith.constant 1.000000e+00 : f32
    %cst_60 = arith.constant 0.000000e+00 : f32
    %179 = vector.broadcast %cst_59 : f32 to vector<8x80xf32>
    %180 = vector.broadcast %cst_60 : f32 to vector<8x80xf32>
    %181 = arith.select %178, %179, %180 : vector<8x80xi1>, vector<8x80xf32>
    %182 = vector.extract_strided_slice %0 {offsets = [0, 23], sizes = [8, 1], strides = [1, 1]} : vector<8x32xi32> to vector<8x1xi32>
    %183 = vector.broadcast %182 : vector<8x1xi32> to vector<8x80xi32>
    %184 = arith.cmpi eq, %183, %139 : vector<8x80xi32>
    %cst_61 = arith.constant 1.000000e+00 : f32
    %cst_62 = arith.constant 0.000000e+00 : f32
    %185 = vector.broadcast %cst_61 : f32 to vector<8x80xf32>
    %186 = vector.broadcast %cst_62 : f32 to vector<8x80xf32>
    %187 = arith.select %184, %185, %186 : vector<8x80xi1>, vector<8x80xf32>
    %188 = arith.addf %145, %151 : vector<8x80xf32>
    %189 = arith.addf %157, %163 : vector<8x80xf32>
    %190 = arith.addf %169, %175 : vector<8x80xf32>
    %191 = arith.addf %181, %187 : vector<8x80xf32>
    %192 = arith.addf %188, %189 : vector<8x80xf32>
    %193 = arith.addf %190, %191 : vector<8x80xf32>
    %194 = arith.addf %192, %193 : vector<8x80xf32>
    %cst_63 = arith.constant dense<0.000000e+00> : vector<8x16xf32>
    %195 = tpu.matmul %194, %138, %cst_63 {dimension_numbers = #tpu.dot_dimension_numbers<[1], [0], [0], [1], [0, 0, 1, 1], [], []>} : vector<8x80xf32>, vector<80x16xf32>, vector<8x16xf32> -> vector<8x16xf32>
    %196 = tpu.iota {dimensions = array<i32: 0>} : vector<16x256xi32>
    %197 = tpu.iota {dimensions = array<i32: 1>} : vector<16x256xi32>
    %c96_i32 = arith.constant 96 : i32
    %198 = vector.broadcast %c96_i32 : i32 to vector<16x256xi32>
    %199 = arith.addi %196, %198 : vector<16x256xi32>
    %200 = arith.cmpi eq, %197, %199 : vector<16x256xi32>
    %cst_64 = arith.constant 1.000000e+00 : f32
    %cst_65 = arith.constant 0.000000e+00 : f32
    %201 = vector.broadcast %cst_64 : f32 to vector<16x256xf32>
    %202 = vector.broadcast %cst_65 : f32 to vector<16x256xf32>
    %203 = arith.select %200, %201, %202 : vector<16x256xi1>, vector<16x256xf32>
    %cst_66 = arith.constant dense<0.000000e+00> : vector<8x256xf32>
    %204 = tpu.matmul %195, %203, %cst_66 {dimension_numbers = #tpu.dot_dimension_numbers<[1], [0], [0], [1], [0, 0, 1, 1], [], []>} : vector<8x16xf32>, vector<16x256xf32>, vector<8x256xf32> -> vector<8x256xf32>
    %205 = arith.addf %137, %204 : vector<8x256xf32>
    %c0_67 = arith.constant 0 : index
    %c0_68 = arith.constant 0 : index
    %206 = vector.load %arg3[%c0_67, %c0_68] : memref<50x64xf32, #tpu.memory_space<vmem>>, vector<50x64xf32>
    %207 = tpu.iota {dimensions = array<i32: 1>} : vector<8x50xi32>
    %208 = vector.extract_strided_slice %0 {offsets = [0, 24], sizes = [8, 1], strides = [1, 1]} : vector<8x32xi32> to vector<8x1xi32>
    %209 = vector.broadcast %208 : vector<8x1xi32> to vector<8x50xi32>
    %210 = arith.cmpi eq, %209, %207 : vector<8x50xi32>
    %cst_69 = arith.constant 1.000000e+00 : f32
    %cst_70 = arith.constant 0.000000e+00 : f32
    %211 = vector.broadcast %cst_69 : f32 to vector<8x50xf32>
    %212 = vector.broadcast %cst_70 : f32 to vector<8x50xf32>
    %213 = arith.select %210, %211, %212 : vector<8x50xi1>, vector<8x50xf32>
    %214 = vector.extract_strided_slice %0 {offsets = [0, 25], sizes = [8, 1], strides = [1, 1]} : vector<8x32xi32> to vector<8x1xi32>
    %215 = vector.broadcast %214 : vector<8x1xi32> to vector<8x50xi32>
    %216 = arith.cmpi eq, %215, %207 : vector<8x50xi32>
    %cst_71 = arith.constant 1.000000e+00 : f32
    %cst_72 = arith.constant 0.000000e+00 : f32
    %217 = vector.broadcast %cst_71 : f32 to vector<8x50xf32>
    %218 = vector.broadcast %cst_72 : f32 to vector<8x50xf32>
    %219 = arith.select %216, %217, %218 : vector<8x50xi1>, vector<8x50xf32>
    %220 = vector.extract_strided_slice %0 {offsets = [0, 26], sizes = [8, 1], strides = [1, 1]} : vector<8x32xi32> to vector<8x1xi32>
    %221 = vector.broadcast %220 : vector<8x1xi32> to vector<8x50xi32>
    %222 = arith.cmpi eq, %221, %207 : vector<8x50xi32>
    %cst_73 = arith.constant 1.000000e+00 : f32
    %cst_74 = arith.constant 0.000000e+00 : f32
    %223 = vector.broadcast %cst_73 : f32 to vector<8x50xf32>
    %224 = vector.broadcast %cst_74 : f32 to vector<8x50xf32>
    %225 = arith.select %222, %223, %224 : vector<8x50xi1>, vector<8x50xf32>
    %226 = vector.extract_strided_slice %0 {offsets = [0, 27], sizes = [8, 1], strides = [1, 1]} : vector<8x32xi32> to vector<8x1xi32>
    %227 = vector.broadcast %226 : vector<8x1xi32> to vector<8x50xi32>
    %228 = arith.cmpi eq, %227, %207 : vector<8x50xi32>
    %cst_75 = arith.constant 1.000000e+00 : f32
    %cst_76 = arith.constant 0.000000e+00 : f32
    %229 = vector.broadcast %cst_75 : f32 to vector<8x50xf32>
    %230 = vector.broadcast %cst_76 : f32 to vector<8x50xf32>
    %231 = arith.select %228, %229, %230 : vector<8x50xi1>, vector<8x50xf32>
    %232 = vector.extract_strided_slice %0 {offsets = [0, 28], sizes = [8, 1], strides = [1, 1]} : vector<8x32xi32> to vector<8x1xi32>
    %233 = vector.broadcast %232 : vector<8x1xi32> to vector<8x50xi32>
    %234 = arith.cmpi eq, %233, %207 : vector<8x50xi32>
    %cst_77 = arith.constant 1.000000e+00 : f32
    %cst_78 = arith.constant 0.000000e+00 : f32
    %235 = vector.broadcast %cst_77 : f32 to vector<8x50xf32>
    %236 = vector.broadcast %cst_78 : f32 to vector<8x50xf32>
    %237 = arith.select %234, %235, %236 : vector<8x50xi1>, vector<8x50xf32>
    %238 = vector.extract_strided_slice %0 {offsets = [0, 29], sizes = [8, 1], strides = [1, 1]} : vector<8x32xi32> to vector<8x1xi32>
    %239 = vector.broadcast %238 : vector<8x1xi32> to vector<8x50xi32>
    %240 = arith.cmpi eq, %239, %207 : vector<8x50xi32>
    %cst_79 = arith.constant 1.000000e+00 : f32
    %cst_80 = arith.constant 0.000000e+00 : f32
    %241 = vector.broadcast %cst_79 : f32 to vector<8x50xf32>
    %242 = vector.broadcast %cst_80 : f32 to vector<8x50xf32>
    %243 = arith.select %240, %241, %242 : vector<8x50xi1>, vector<8x50xf32>
    %244 = vector.extract_strided_slice %0 {offsets = [0, 30], sizes = [8, 1], strides = [1, 1]} : vector<8x32xi32> to vector<8x1xi32>
    %245 = vector.broadcast %244 : vector<8x1xi32> to vector<8x50xi32>
    %246 = arith.cmpi eq, %245, %207 : vector<8x50xi32>
    %cst_81 = arith.constant 1.000000e+00 : f32
    %cst_82 = arith.constant 0.000000e+00 : f32
    %247 = vector.broadcast %cst_81 : f32 to vector<8x50xf32>
    %248 = vector.broadcast %cst_82 : f32 to vector<8x50xf32>
    %249 = arith.select %246, %247, %248 : vector<8x50xi1>, vector<8x50xf32>
    %250 = vector.extract_strided_slice %0 {offsets = [0, 31], sizes = [8, 1], strides = [1, 1]} : vector<8x32xi32> to vector<8x1xi32>
    %251 = vector.broadcast %250 : vector<8x1xi32> to vector<8x50xi32>
    %252 = arith.cmpi eq, %251, %207 : vector<8x50xi32>
    %cst_83 = arith.constant 1.000000e+00 : f32
    %cst_84 = arith.constant 0.000000e+00 : f32
    %253 = vector.broadcast %cst_83 : f32 to vector<8x50xf32>
    %254 = vector.broadcast %cst_84 : f32 to vector<8x50xf32>
    %255 = arith.select %252, %253, %254 : vector<8x50xi1>, vector<8x50xf32>
    %256 = arith.addf %213, %219 : vector<8x50xf32>
    %257 = arith.addf %225, %231 : vector<8x50xf32>
    %258 = arith.addf %237, %243 : vector<8x50xf32>
    %259 = arith.addf %249, %255 : vector<8x50xf32>
    %260 = arith.addf %256, %257 : vector<8x50xf32>
    %261 = arith.addf %258, %259 : vector<8x50xf32>
    %262 = arith.addf %260, %261 : vector<8x50xf32>
    %cst_85 = arith.constant dense<0.000000e+00> : vector<8x64xf32>
    %263 = tpu.matmul %262, %206, %cst_85 {dimension_numbers = #tpu.dot_dimension_numbers<[1], [0], [0], [1], [0, 0, 1, 1], [], []>} : vector<8x50xf32>, vector<50x64xf32>, vector<8x64xf32> -> vector<8x64xf32>
    %264 = tpu.iota {dimensions = array<i32: 0>} : vector<64x256xi32>
    %265 = tpu.iota {dimensions = array<i32: 1>} : vector<64x256xi32>
    %c112_i32 = arith.constant 112 : i32
    %266 = vector.broadcast %c112_i32 : i32 to vector<64x256xi32>
    %267 = arith.addi %264, %266 : vector<64x256xi32>
    %268 = arith.cmpi eq, %265, %267 : vector<64x256xi32>
    %cst_86 = arith.constant 1.000000e+00 : f32
    %cst_87 = arith.constant 0.000000e+00 : f32
    %269 = vector.broadcast %cst_86 : f32 to vector<64x256xf32>
    %270 = vector.broadcast %cst_87 : f32 to vector<64x256xf32>
    %271 = arith.select %268, %269, %270 : vector<64x256xi1>, vector<64x256xf32>
    %cst_88 = arith.constant dense<0.000000e+00> : vector<8x256xf32>
    %272 = tpu.matmul %263, %271, %cst_88 {dimension_numbers = #tpu.dot_dimension_numbers<[1], [0], [0], [1], [0, 0, 1, 1], [], []>} : vector<8x64xf32>, vector<64x256xf32>, vector<8x256xf32> -> vector<8x256xf32>
    %273 = arith.addf %205, %272 : vector<8x256xf32>
    %c0_89 = arith.constant 0 : index
    %c0_90 = arith.constant 0 : index
    %274 = vector.load %arg5[%c0_89, %c0_90] : memref<8x256xf32, #tpu.memory_space<vmem>>, vector<8x256xf32>
    tpu.vector_store %arg5[%c0_89, %c0_90], %273 {strides = array<i32>} : memref<8x256xf32, #tpu.memory_space<vmem>>, vector<8x256xf32>,
    return
  }
  func.func @transform_0(%arg0: i32) -> (i32, i32) {
    %c0_i32 = arith.constant 0 : i32
    %c0_i32_0 = arith.constant 0 : i32
    return %arg0, %c0_i32 : i32, i32
  }
  func.func @transform_1(%arg0: i32) -> (i32, i32) {
    %c0_i32 = arith.constant 0 : i32
    %c0_i32_0 = arith.constant 0 : i32
    %c0_i32_1 = arith.constant 0 : i32
    return %c0_i32, %c0_i32_0 : i32, i32
  }
  func.func @transform_2(%arg0: i32) -> (i32, i32) {
    %c0_i32 = arith.constant 0 : i32
    %c0_i32_0 = arith.constant 0 : i32
    %c0_i32_1 = arith.constant 0 : i32
    return %c0_i32, %c0_i32_0 : i32, i32
  }
  func.func @transform_3(%arg0: i32) -> (i32, i32) {
    %c0_i32 = arith.constant 0 : i32
    %c0_i32_0 = arith.constant 0 : i32
    %c0_i32_1 = arith.constant 0 : i32
    return %c0_i32, %c0_i32_0 : i32, i32
  }
  func.func @transform_4(%arg0: i32) -> (i32, i32) {
    %c0_i32 = arith.constant 0 : i32
    %c0_i32_0 = arith.constant 0 : i32
    return %arg0, %c0_i32 : i32, i32
  }
}

</mosaic_0001>

<bundles_post_ra>
// kernel: tpu_custom_call.1
= control target key start
LH: loop header
LB: loop body
LE: loop exit
PB: predicated region body
PF: predicated region fallthrough
CT: control target
= control target key end

     0   :  { %9 = vsyncpa [#allocation3], 0  ;;  %s2156_s0 = inlined_call_operand.vmem [shape: s32[16,32], index: 0, kind: input, shape index: {}]   ;;  %s2157_s1 = inlined_call_operand.vmem [shape: f32[100,32], index: 1, kind: input, shape index: {}]   ;;  %s2158_s2 = inlined_call_operand.vmem [shape: f32[50,64], index: 2, kind: input, shape index: {}]   ;;  %s2159_s3 = inlined_call_operand.vmem [shape: f32[80,16], index: 3, kind: input, shape index: {}]   ;;  %s2160_s4 = inlined_call_operand.hbm [shape: f32[16,256], index: 4, kind: output, shape index: {}]  }
   0x1   :  { %11 = vsyncpa [#allocation3 + $0x1], 0  ;;  %s1667_s15 = smov 0   ;;  %s1669_s16 = smov 0  }
   0x2   :  { %s1671_s17 = smov 0   ;;  %s1673_s18 = smov 0  }
   0x3 LB: > { %s1688_s19 = sadd.s32 4294967295, %s1604_s18   ;;  %s1211_s20 = sadd.s32 4294967294, %s1604_s18   ;;  %s1604_s18 = sphi %s1673_s18, %s2166_s18   ;;  %s1600_s17 = sphi %s1671_s17, %s2165_s17   ;;  %s1596_s16 = sphi %s1669_s16, %s2164_s16   ;;  %s1592_s15 = sphi %s1667_s15, %s2163_s15  }
   0x4   : > { %s1692_s21 = sadd.s32 1, %s1604_s18   ;;  %s113_s22 = sadd.s32 1, %s1600_s17 }
   0x5   : > { %s110_s23 = ssub.s32 %s1604_s18, %s1692_s21  ;;  %p123_p0 = scmp.ne.s32.totalorder %s1600_s17, %s1596_s16 }
   0x6   : > { %p111_p1 = scmp.eq.s32.totalorder %s110_s23, 0  ;;  %p124_p2 = scmp.eq.s32.totalorder %s1688_s19, 1 }
   0x7   : > { %p129_p3 = scmp.ne.s32.totalorder %s1596_s16, %s1592_s15  ;;  %p130_p4 = scmp.eq.s32.totalorder %s1211_s20, 1 }
   0x8   : > { %s1703_s24 = scalar_select %p111_p1, %s1600_s17, %s113_s22  }
   0x9   : > { %p1705_p5 = por %p124_p2, %p123_p0  ;;  %p1709_p6 = por %p130_p4, %p129_p3 }
   0xa   : > { %p1214_p7 = scmp.ge.s32.totalorder %s1604_s18, 1  ;;  %p164_p8 = scmp.lt.s32.totalorder %s1604_s18, 3 }
   0xc   : > { %p165_p9 = pnand %p1214_p7, %p164_p8 }
   0xd   : > { %p189_p10 = scmp.lt.s32.totalorder (!%p165_p9), %s1688_s19, 1  ;;  %s186_s20 = sand.u32 (!%p165_p9), 1, %s1596_s16  }
   0xe   : > { %168 = sbr.rel (%p165_p9) target bundleno = 997 (0x3e5), region = 36  ;;  %s1215_s22 = sshll.u32 (!%p165_p9), %s186_s20, 4 }
   0xf   : > { %s1255_s23 = sshll.u32 (!%p165_p9), %s1688_s19, 8  ;;  %s1138_s6 = scalar_lea.sflag (!%p165_p9), [#allocation3], %s186_s20 }
  0x13   : > { %v1606_v0 = vmov 10   ;;  %v1607_v1 = vmov 8   ;;  %s190_s27 = scalar_select %p189_p10, %s1688_s19, 1  ;;  %v1608_v2 = vmov 0.0   ;;  %v1609_v4 = vmov 11   ;;  %v1741_v9 = vld [vmem:[%s2158_s2 + $0x28] sm:$0xff] }
  0x14   : > { %1513 = vset.pattern.permute.xlu1 %v1606_v0  ;;  %1511 = vset.pattern.permute.xlu0 %v1607_v1  ;;  %v1610_v5 = vmov 9   ;;  %v1611_v6 = vmov 12   ;;  %v1612_v7 = vmov 13   ;;  %v1733_v8 = vld [vmem:[%s2158_s2 + $0x30] sm:$0x3]  ;;  %vm414_vm0 = vcmask 1041408  }
  0x15   : > { %s1216_s28 = sshll.u32 %s190_s27, 3  ;;  %1343 = vmatprep.subr.mxu1 %v1608_v2  ;;  %1314 = vmatprep.subr.mxu0 %v1608_v2  ;;  %v1613_v10 = vmov 14   ;;  %v1614_v11 = vmov 0   ;;  %v1747_v12 = vld [vmem:[%s2158_s2 + $0x20] sm:$0xff]  ;;  %v1757_v13 = vld [vmem:[%s2158_s2 + $0x18] sm:$0xff]  ;;  %v1615_v14 = vmov 15   ;;  %v207_v50 = vlaneseq }
  0x16   : > { %s192_s5 = scalar_lea.vmem %s2156_s0, %s1216_s28  ;;  %1344 = vmatpush3.msk.msra.mxu1 %vm414_vm0, %v1733_v8  ;;  %v1616_v15 = vmov 3   ;;  %v1764_v16 = vld [vmem:[%s2158_s2 + $0x10] sm:$0xff]  ;;  %vm1617_vm1 = vmmov 0   ;;  %v206_v17 = vld [vmem:[%s2157_s1 + $0x60] sm:$0xf]  ;;  %vm260_vm2 = vcmask 1043456  }
  0x17   : > { %v1722_v3 = vld [vmem:[%s192_s5] sm:$0xff]  ;;  %1345 = vmatprep.subr.mxu1 %v1608_v2  ;;  %1357 = vmatprep.mubr.msk.f32.mxu1 %vm1617_vm1, %v1608_v2  ;;  %v1618_v18 = vmov 1   ;;  %v1619_v19 = vmov 6   ;;  %v1777_v20 = vld [vmem:[%s2158_s2 + $0x8] sm:$0xff]  ;;  %v205_v21 = vld [vmem:[%s2157_s1 + $0x58] sm:$0xff]  ;;  %v1620_v24 = vmov 2   ;;  %s2115_s5 = scalar_lea.hbm %s2160_s4, %s1255_s23 }
  0x18   : > { %374 = vperm.xlu1 %1513, %v1722_v3   ;;  %364 = vperm.xlu0 %1511, %v1722_v3   ;;  %v1788_v22 = vld [vmem:[%s2158_s2] sm:$0xff]  ;;  %v204_v23 = vld [vmem:[%s2157_s1 + $0x50] sm:$0xff]  ;;  %v203_v25 = vld [vmem:[%s2157_s1 + $0x48] sm:$0xff]  ;;  %v1621_v27 = vmov 4   ;;  %v1622_v31 = vmov 5   ;;  %v1623_v34 = vmov 7  }
  0x19   : > { %1346 = vmatpush3.msra.mxu1 %v1741_v9  ;;  %1315 = vmatpush3.msk.msra.mxu0 %vm260_vm2, %v206_v17  ;;  %v202_v26 = vld [vmem:[%s2157_s1 + $0x40] sm:$0xff]  ;;  %v201_v28 = vld [vmem:[%s2157_s1 + $0x38] sm:$0xff]  ;;  %v200_v29 = vld [vmem:[%s2157_s1 + $0x30] sm:$0xff]  ;;  %v1624_v38 = vmov 16   ;;  %v1625_v39 = vmov 17   ;;  %v1626_v40 = vmov 18  }
  0x1a   : > { %1347 = vmatprep.subr.mxu1 %v1608_v2  ;;  %1316 = vmatprep.subr.mxu0 %v1608_v2  ;;  %v199_v30 = vld [vmem:[%s2157_s1 + $0x28] sm:$0xff]  ;;  %v198_v32 = vld [vmem:[%s2157_s1 + $0x20] sm:$0xff]  ;;  %v197_v33 = vld [vmem:[%s2157_s1 + $0x18] sm:$0xff]  ;;  %v1627_v41 = vmov 20   ;;  %v1628_v42 = vmov 19   ;;  %v1629_v43 = vmov 23  }
  0x1b   : > { %1348 = vmatpush3.msra.mxu1 %v1747_v12  ;;  %1317 = vmatpush3.msra.mxu0 %v205_v21  ;;  %v196_v35 = vld [vmem:[%s2157_s1 + $0x10] sm:$0xff]  ;;  %v195_v36 = vld [vmem:[%s2157_s1 + $0x8] sm:$0xff]  ;;  %v194_v37 = vld [vmem:[%s2157_s1] sm:$0xff]  ;;  %v1630_v44 = vmov 21   ;;  %v1631_v45 = vmov 22   ;;  %v1854_v52 = vand.u32 127, %v207_v50 }
  0x1c   : > { %1514 = vset.pattern.permute.xlu1 %v1609_v4  ;;  %1512 = vset.pattern.permute.xlu0 %v1610_v5  ;;  %v1859_v55 = vshrl.u32 %v207_v50, 7  ;;  %vm410_vm11 = vcmask 408576   ;;  %s188_s27 = scalar_lea.vmem [#allocation2], %s1215_s22  ;;  %s1641_s19 = smov [#allocation2]  }
  0x1d   : > { %379 = vperm.xlu1 %1514, %v1722_v3   ;;  %369 = vperm.xlu0 %1512, %v1722_v3   ;;  %s1152_s28 = sshll.u32 %s188_s27, 4  ;;  %s1548_s8 = sshll.u32 %s1641_s19, 4  ;;  %s2117_s28 = int_to_ptr.vmem [resolvable:$true] %s1152_s28  ;;  %s1549_s8 = int_to_ptr.vmem [resolvable:$false] %s1548_s8 }
  0x1e   : > { %1349 = vmatprep.subr.mxu1 %v1608_v2  ;;  %1318 = vmatprep.subr.mxu0 %v1608_v2  ;;  %v1869_v59 = vadd.s32 56, %v1859_v55  ;;  %v1876_v4 = vadd.s32 48, %v1859_v55  ;;  %v1886_v21 = vadd.s32 32, %v1859_v55  ;;  %s1544_s7 = scalar_lea.vmem %s2117_s28, 256  ;;  %s1550_s9 = scalar_lea.vmem %s1549_s8, 512 }
  0x1f   : > { %1350 = vmatpush3.msra.mxu1 %v1757_v13  ;;  %1319 = vmatpush3.msra.mxu0 %v204_v23  ;;  %p1545_p11 = scmp.ne.s32.totalorder %s2117_s28, %s1544_s7  ;;  %p1551_p0 = scmp.lt.s32.totalorder %s2117_s28, %s1549_s8 }
  0x20   : > { %1351 = vmatprep.subr.mxu1 %v1608_v2  ;;  %1340 = vmatprep.mubr.msk.f32.mxu0 %vm1617_vm1, %v1608_v2  ;;  %p1552_p1 = scmp.lt.s32.totalorder %s1550_s9, %s1544_s7 }
  0x21   : > { %1515 = vset.pattern.permute.xlu1 %v1611_v6  ;;  %1516 = vset.pattern.permute.xlu0 %v1612_v7  ;;  %p1546_p12 = pnand %p1545_p11, %p1705_p5 }
  0x22   : > { %384 = vperm.xlu1 %1515, %v1722_v3   ;;  %389 = vperm.xlu0 %1516, %v1722_v3   ;;  %p1553_p2 = por %p1552_p1, %p1551_p0 }
  0x23   : > { %1352 = vmatpush3.msra.mxu1 %v1764_v16  ;;  %1320 = vmatprep.subr.mxu0 %v1608_v2  ;;  %p1547_p13 = pneg %p1546_p12 }
  0x24   : > { %1353 = vmatprep.subr.mxu1 %v1608_v2  ;;  %1321 = vmatpush3.msra.mxu0 %v203_v25 }
  0x25   : > { %1354 = vmatpush3.msra.mxu1 %v1777_v20  ;;  %1322 = vmatprep.subr.mxu0 %v1608_v2  ;;  %p1554_p3 = pnand %p1553_p2, %p1547_p13 }
  0x26   : > { %1517 = vset.pattern.permute.xlu1 %v1613_v10  ;;  %1519 = vset.pattern.permute.xlu0 %v1614_v11  ;;  %v498_v11 = vadd.s32 32, %v1869_v59 }
  0x27   : > { %394 = vperm.xlu1 %1517, %v1722_v3   ;;  %210 = vperm.xlu0 %1519, %v1722_v3  }
  0x28   : > { %1355 = vmatprep.subr.mxu1 %v1608_v2  ;;  %1323 = vmatpush3.msra.mxu0 %v202_v26  ;;  %vm513_vm12 = vcmp.eq.s32.totalorder %v1854_v52, %v498_v11  ;;  %v1891_v26 = vadd.s32 24, %v1859_v55 }
  0x29   : > { %1356 = vmatpush3.msra.mxu1 %v1788_v22  ;;  %1324 = vmatprep.subr.mxu0 %v1608_v2 }
  0x2a   : > { %1360 = vmatprep.subr.mxu1 %v1608_v2  ;;  %1325 = vmatpush3.msra.mxu0 %v201_v28  ;;  %v1897_v28 = vadd.s32 16, %v1859_v55 }
  0x2b   : > { %1518 = vset.pattern.permute.xlu1 %v1615_v14  ;;  %1522 = vset.pattern.permute.xlu0 %v1616_v15  ;;  %v1882_v14 = vadd.s32 40, %v1859_v55 }
  0x2c   : > { %399 = vperm.xlu1 %1518, %v1722_v3   ;;  %225 = vperm.xlu0 %1522, %v1722_v3  }
  0x2d   : > { %1326 = vmatprep.subr.mxu0 %v1608_v2  ;;  %v496_v25 = vadd.s32 32, %v1882_v14 }
  0x2e   : > { %1327 = vmatpush3.msra.mxu0 %v200_v29 }
  0x2f   : > { %1328 = vmatprep.subr.mxu0 %v1608_v2  ;;  %vm509_vm14 = vcmp.eq.s32.totalorder %v1854_v52, %v496_v25  ;;  %v688_v25 = vld [vmem:[%s2159_s3 + $0x38] sm:$0xff] }
  0x30   : > { %1520 = vset.pattern.permute.xlu1 %v1618_v18  ;;  %1525 = vset.pattern.permute.xlu0 %v1619_v19  ;;  %v497_v19 = vadd.s32 32, %v1876_v4 }
  0x31   : > { %215 = vperm.xlu1 %1520, %v1722_v3   ;;  %240 = vperm.xlu0 %1525, %v1722_v3  }
  0x32   : > { %1329 = vmatpush3.msra.mxu0 %v199_v30  ;;  %vm511_vm13 = vcmp.eq.s32.totalorder %v1854_v52, %v497_v19  ;;  %v1632_v30 = vmov 1.0  }
  0x33   : > { %1330 = vmatprep.subr.mxu0 %v1608_v2 }
  0x34   : > { %1331 = vmatpush3.msra.mxu0 %v198_v32  ;;  %v1906_v32 = vadd.s32 8, %v1859_v55 }
  0x35   : > { %1521 = vset.pattern.permute.xlu1 %v1620_v24  ;;  %1332 = vmatprep.subr.mxu0 %v1608_v2 }
  0x36   : > { %220 = vperm.xlu1 %1521, %v1722_v3   ;;  %1333 = vmatpush3.msra.mxu0 %v197_v33 }
  0x37   : > { %1334 = vmatprep.subr.mxu0 %v1608_v2  ;;  %1528 = vset.pattern.permute.xlu0 %v1625_v39 }
  0x38   : > { %1335 = vmatpush3.msra.mxu0 %v196_v35  ;;  %697 = vperm.xlu0 %1528, %v1722_v3  }
  0x39   : > { %1336 = vmatprep.subr.mxu0 %v1608_v2 }
  0x3a   : > { %1523 = vset.pattern.permute.xlu1 %v1621_v27  ;;  %1337 = vmatpush3.msra.mxu0 %v195_v36  ;;  %v495_v27 = vadd.s32 32, %v1886_v21  ;;  %v492_v36 = vadd.s32 32, %v1906_v32 }
  0x3b   : > { %230 = vperm.xlu1 %1523, %v1722_v3   ;;  %1338 = vmatprep.subr.mxu0 %v1608_v2 }
  0x3c   : > { %1339 = vmatpush3.msra.mxu0 %v194_v37  ;;  %1531 = vset.pattern.permute.xlu0 %v1627_v41  ;;  %vm507_vm15 = vcmp.eq.s32.totalorder %v1854_v52, %v495_v27  ;;  %v687_v27 = vld [vmem:[%s2159_s3 + $0x30] sm:$0xff] }
  0x3d   : > { %1379 = vmatprep.subr.mxu0 %v1608_v2  ;;  %712 = vperm.xlu0 %1531, %v1722_v3  }
  0x3f   : > { %1524 = vset.pattern.permute.xlu1 %v1622_v31  ;;  %v494_v31 = vadd.s32 32, %v1891_v26 }
  0x40   : > { %235 = vperm.xlu1 %1524, %v1722_v3  }
  0x41   : > { %1534 = vset.pattern.permute.xlu0 %v1629_v43  ;;  %vm505_vm2 = vcmp.eq.s32.totalorder %v1854_v52, %v494_v31 }
  0x42   : > { %727 = vperm.xlu0 %1534, %v1722_v3  }
  0x44   : > { %1526 = vset.pattern.permute.xlu1 %v1623_v34  ;;  %v493_v34 = vadd.s32 32, %v1897_v28 }
  0x45   : > { %245 = vperm.xlu1 %1526, %v1722_v3  }
  0x49   : > { %1527 = vset.pattern.permute.xlu1 %v1624_v38 }
  0x4a   : > { %692 = vperm.xlu1 %1527, %v1722_v3  }
  0x4e   : > { %1529 = vset.pattern.permute.xlu1 %v1626_v40 }
  0x4f   : > { %702 = vperm.xlu1 %1529, %v1722_v3  }
  0x53   : > { %1530 = vset.pattern.permute.xlu1 %v1628_v42 }
  0x54   : > { %707 = vperm.xlu1 %1530, %v1722_v3  }
  0x58   : > { %1532 = vset.pattern.permute.xlu1 %v1630_v44 }
  0x59   : > { %717 = vperm.xlu1 %1532, %v1722_v3  }
  0x5d   : > { %1533 = vset.pattern.permute.xlu1 %v1631_v45 }
  0x5e   : > { %722 = vperm.xlu1 %1533, %v1722_v3  }
  0x93   : > { %v375_v46 = vpop.permute.xlu1 %374  ;;  %v365_v47 = vpop.permute.xlu0 %364 }
  0x94   : > { %vm366_vm3 = vcmp.eq.s32.totalorder %v365_v47, %v1854_v52  ;;  %vm376_vm6 = vcmp.eq.s32.totalorder %v375_v46, %v1854_v52 }
  0x95   : > { %v367_v56 = vsel %vm366_vm3, 1.0, %v1608_v2  ;;  %v377_v60 = vsel %vm376_vm6, 1.0, %v1608_v2 }
  0x98   : > { %v380_v48 = vpop.permute.xlu1 %379  ;;  %v370_v49 = vpop.permute.xlu0 %369 }
  0x99   : > { %vm381_vm4 = vcmp.eq.s32.totalorder %v380_v48, %v1854_v52  ;;  %vm371_vm5 = vcmp.eq.s32.totalorder %v370_v49, %v1854_v52 }
  0x9a   : > { %v382_v57 = vsel %vm381_vm4, 1.0, %v1608_v2  ;;  %v372_v58 = vsel %vm371_vm5, 1.0, %v1608_v2  ;;  %vm503_vm4 = vcmp.eq.s32.totalorder %v1854_v52, %v493_v34 }
  0x9b   : > { %v404_v0 = vadd.f32 %v382_v57, %v377_v60  ;;  %v403_v1 = vadd.f32 %v372_v58, %v367_v56  ;;  %v1633_v57 = vmov 24   ;;  %v1634_v58 = vmov 26  }
  0x9c   : > { %1535 = vset.pattern.permute.xlu1 %v1633_v57  ;;  %1537 = vset.pattern.permute.xlu0 %v1634_v58  ;;  %v1635_v60 = vmov 25   ;;  %v812_v57 = vadd.s32 96, %v1859_v55  ;;  %v2042_v58 = vadd.s32 128, %v1854_v52 }
  0x9d   : > { %v385_v51 = vpop.permute.xlu1 %384  ;;  %v390_v53 = vpop.permute.xlu0 %389  ;;  %v407_v15 = vadd.f32 %v404_v0, %v403_v1  ;;  %900 = vperm.xlu1 %1535, %v1722_v3   ;;  %910 = vperm.xlu0 %1537, %v1722_v3   ;;  %v1639_v0 = vmov 28   ;;  %v1640_v1 = vmov 30  }
  0x9e   : > { %vm386_vm7 = vcmp.eq.s32.totalorder %v385_v51, %v1854_v52  ;;  %vm391_vm8 = vcmp.eq.s32.totalorder %v390_v53, %v1854_v52 }
  0x9f   : > { %v387_v61 = vsel %vm386_vm7, 1.0, %v1608_v2  ;;  %v392_v62 = vsel %vm391_vm8, 1.0, %v1608_v2  ;;  %vm501_vm8 = vcmp.eq.s32.totalorder %v1854_v52, %v492_v36 }
  0xa0   : > { %v405_v7 = vadd.f32 %v392_v62, %v387_v61  ;;  %v1636_v61 = vmov 29   ;;  %v1637_v62 = vmov 27  }
  0xa1   : > { %1536 = vset.pattern.permute.xlu1 %v1635_v60  ;;  %1540 = vset.pattern.permute.xlu0 %v1636_v61  ;;  %v1026_v60 = vadd.s32 112, %v1869_v59 }
  0xa2   : > { %v395_v54 = vpop.permute.xlu1 %394  ;;  %v211_v24 = vpop.permute.xlu0 %210  ;;  %905 = vperm.xlu1 %1536, %v1722_v3   ;;  %925 = vperm.xlu0 %1540, %v1722_v3  }
  0xa3   : > { %vm396_vm9 = vcmp.eq.s32.totalorder %v395_v54, %v1854_v52  ;;  %vm212_vm3 = vcmp.eq.s32.totalorder %v211_v24, %v1854_v52 }
  0xa4   : > { %v397_v5 = vsel %vm396_vm9, 1.0, %v1608_v2  ;;  %v213_v38 = vsel %vm212_vm3, 1.0, %v1608_v2  ;;  %vm344_vm3 = vcmp.eq.s32.totalorder %v1854_v52, %v1897_v28 }
  0xa6   : > { %1538 = vset.pattern.permute.xlu1 %v1637_v62 }
  0xa7   : > { %v400_v63 = vpop.permute.xlu1 %399  ;;  %v226_v33 = vpop.permute.xlu0 %225  ;;  %915 = vperm.xlu1 %1538, %v1722_v3  }
  0xa8   : > { %vm401_vm10 = vcmp.eq.s32.totalorder %v400_v63, %v1854_v52  ;;  %vm227_vm7 = vcmp.eq.s32.totalorder %v226_v33, %v1854_v52  ;;  %v1638_v63 = vmov 31  }
  0xa9   : > { %v402_v6 = vsel %vm401_vm10, 1.0, %v1608_v2  ;;  %vm499_vm10 = vcmp.eq.s32.totalorder %v1854_v52, %v1886_v21  ;;  %v228_v42 = vsel %vm227_vm7, 1.0, %v1608_v2  ;;  %1543 = vset.pattern.permute.xlu0 %v1638_v63 }
  0xaa   : > { %v406_v10 = vadd.f32 %v402_v6, %v397_v5 }
  0xab   : > { %1539 = vset.pattern.permute.xlu1 %v1639_v0 }
  0xac   : > { %v408_v17 = vadd.f32 %v406_v10, %v405_v7  ;;  %v216_v18 = vpop.permute.xlu1 %215  ;;  %v241_v37 = vpop.permute.xlu0 %240  ;;  %920 = vperm.xlu1 %1539, %v1722_v3  }
  0xad   : > { %vm217_vm5 = vcmp.eq.s32.totalorder %v216_v18, %v1854_v52 }
  0xae   : > { %v409_v23 = vadd.f32 %v408_v17, %v407_v15  ;;  %v218_v40 = vsel %vm217_vm5, 1.0, %v1608_v2  ;;  %vm340_vm5 = vcmp.eq.s32.totalorder %v1854_v52, %v1859_v55  ;;  %v690_v17 = vld [vmem:[%s2159_s3 + $0x48] sm:$0xff] }
  0xaf   : > { %v249_v45 = vadd.f32 %v218_v40, %v213_v38  ;;  %v685_v40 = vld [vmem:[%s2159_s3 + $0x20] sm:$0xff] }
  0xb0   : > { %1358 = vmatmul.mubr.msk.f32.vlgmr.msra.gmra.mxu1 %vm410_vm11, %v409_v23  ;;  %1541 = vset.pattern.permute.xlu1 %v1640_v1  ;;  %v689_v23 = vld [vmem:[%s2159_s3 + $0x40] sm:$0xff] }
  0xb1   : > { %v221_v29 = vpop.permute.xlu1 %220  ;;  %1361 = vmatpush3.msk.msra.mxu1 %vm513_vm12, %v1632_v30  ;;  %1376 = vmatprep.mubr.msk.f32.mxu1 %vm1617_vm1, %v1608_v2 }
  0xb2   : > { %1362 = vmatprep.subr.mxu1 %v1608_v2  ;;  %vm222_vm6 = vcmp.eq.s32.totalorder %v221_v29, %v1854_v52  ;;  %930 = vperm.xlu1 %1541, %v1722_v3  }
  0xb3   : > { %1363 = vmatpush3.msk.msra.mxu1 %vm511_vm13, %v1632_v30  ;;  %v223_v41 = vsel %vm222_vm6, 1.0, %v1608_v2  ;;  %vm242_vm13 = vcmp.eq.s32.totalorder %v241_v37, %v1854_v52  ;;  %v698_v7 = vpop.permute.xlu0 %697  ;;  %vm531_vm6 = vcmask 523264  }
  0xb4   : > { %1364 = vmatprep.subr.mxu1 %v1608_v2  ;;  %v250_v46 = vadd.f32 %v228_v42, %v223_v41  ;;  %v243_v48 = vsel %vm242_vm13, 1.0, %v1608_v2 }
  0xb5   : > { %1365 = vmatpush3.msk.msra.mxu1 %vm509_vm14, %v1632_v30 }
  0xb6   : > { %v231_v35 = vpop.permute.xlu1 %230  ;;  %1366 = vmatprep.subr.mxu1 %v1608_v2  ;;  %v253_v51 = vadd.f32 %v250_v46, %v249_v45  ;;  %1542 = vset.pattern.permute.xlu1 %v1638_v63  ;;  %v684_v45 = vld [vmem:[%s2159_s3 + $0x18] sm:$0xff]  ;;  %v683_v46 = vld [vmem:[%s2159_s3 + $0x10] sm:$0xff] }
  0xb7   : > { %1367 = vmatpush3.msk.msra.mxu1 %vm507_vm15, %v1632_v30  ;;  %vm232_vm9 = vcmp.eq.s32.totalorder %v231_v35, %v1854_v52  ;;  %vm256_vm15 = vcmask 818176   ;;  %935 = vperm.xlu1 %1542, %v1722_v3   ;;  %v686_v35 = vld [vmem:[%s2159_s3 + $0x28] sm:$0xff] }
  0xb8   : > { %1368 = vmatprep.subr.mxu1 %v1608_v2  ;;  %v233_v43 = vsel %vm232_vm9, 1.0, %v1608_v2  ;;  %v713_v11 = vpop.permute.xlu0 %712  ;;  %vm699_vm9 = vcmp.eq.s32.totalorder %v698_v7, %v1854_v52 }
  0xb9   : > { %1369 = vmatpush3.msk.msra.mxu1 %vm505_vm2, %v1632_v30  ;;  %vm346_vm2 = vcmp.eq.s32.totalorder %v1854_v52, %v1891_v26  ;;  %v700_v33 = vsel %vm699_vm9, 1.0, %v1608_v2 }
  0xba   : > { %1370 = vmatprep.subr.mxu1 %v1608_v2 }
  0xbb   : > { %v236_v39 = vpop.permute.xlu1 %235  ;;  %1371 = vmatpush3.msk.msra.mxu1 %vm503_vm4, %v1632_v30  ;;  %vm342_vm4 = vcmp.eq.s32.totalorder %v1854_v52, %v1906_v32 }
  0xbc   : > { %vm237_vm12 = vcmp.eq.s32.totalorder %v236_v39, %v1854_v52  ;;  %1372 = vmatprep.subr.mxu1 %v1608_v2 }
  0xbd   : > { %1373 = vmatpush3.msk.msra.mxu1 %vm501_vm8, %v1632_v30  ;;  %v238_v44 = vsel %vm237_vm12, 1.0, %v1608_v2  ;;  %v728_v19 = vpop.permute.xlu0 %727 }
  0xbe   : > { %1374 = vmatprep.subr.mxu1 %v1608_v2  ;;  %v251_v49 = vadd.f32 %v238_v44, %v233_v43 }
  0xbf   : > { %1375 = vmatpush3.msk.msra.mxu1 %vm499_vm10, %v1632_v30  ;;  %vm714_vm10 = vcmp.eq.s32.totalorder %v713_v11, %v1854_v52 }
  0xc0   : > { %v246_v47 = vpop.permute.xlu1 %245  ;;  %1390 = vmatprep.subr.mxu1 %v1608_v2  ;;  %v715_v34 = vsel %vm714_vm10, 1.0, %v1608_v2 }
  0xc1   : > { %vm247_vm14 = vcmp.eq.s32.totalorder %v246_v47, %v1854_v52 }
  0xc2   : > { %v248_v50 = vsel %vm247_vm14, 1.0, %v1608_v2 }
  0xc3   : > { %v252_v53 = vadd.f32 %v248_v50, %v243_v48  ;;  %v681_v50 = vld [vmem:[%s2159_s3] sm:$0xff] }
  0xc5   : > { %v254_v54 = vadd.f32 %v252_v53, %v251_v49  ;;  %v693_v5 = vpop.permute.xlu1 %692  ;;  %v682_v49 = vld [vmem:[%s2159_s3 + $0x8] sm:$0xff] }
  0xc6   : > { %vm694_vm7 = vcmp.eq.s32.totalorder %v693_v5, %v1854_v52 }
  0xc7   : > { %v255_v56 = vadd.f32 %v254_v54, %v253_v51  ;;  %v695_v29 = vsel %vm694_vm7, 1.0, %v1608_v2  ;;  %vm1042_vm7 = vcmp.eq.s32.totalorder %v2042_v58, %v1026_v60 }
  0xc8   : > { %v731_v42 = vadd.f32 %v700_v33, %v695_v29 }
  0xc9   : > { %1341 = vmatmul.mubr.msk.f32.vlgmr.msra.gmra.mxu0 %vm256_vm15, %v255_v56  ;;  %vm729_vm15 = vcmp.eq.s32.totalorder %v728_v19, %v1854_v52  ;;  %v813_v56 = vadd.s32 96, %v1906_v32 }
  0xca   : > { %1387 = vmatprep.mubr.msk.f32.mxu0 %vm1617_vm1, %v1608_v2  ;;  %1380 = vmatpush3.msk.msra.mxu0 %vm346_vm2, %v1632_v30  ;;  %v703_v6 = vpop.permute.xlu1 %702  ;;  %v730_v39 = vsel %vm729_vm15, 1.0, %v1608_v2  ;;  %vm738_vm2 = vcmask 654336  }
  0xcb   : > { %1381 = vmatprep.subr.mxu0 %v1608_v2  ;;  %vm704_vm8 = vcmp.eq.s32.totalorder %v703_v6, %v1854_v52 }
  0xcc   : > { %1382 = vmatpush3.msk.msra.mxu0 %vm344_vm3, %v1632_v30  ;;  %v705_v31 = vsel %vm704_vm8, 1.0, %v1608_v2  ;;  %vm606_vm3 = vcmask 261120  }
  0xcd   : > { %1383 = vmatprep.subr.mxu0 %v1608_v2 }
  0xce   : > { %1384 = vmatpush3.msk.msra.mxu0 %vm342_vm4, %v1632_v30  ;;  %vm816_vm4 = vcmp.eq.s32.totalorder %v1854_v52, %v813_v56 }
  0xcf   : > { %1385 = vmatprep.subr.mxu0 %v1608_v2  ;;  %v708_v10 = vpop.permute.xlu1 %707 }
  0xd0   : > { %1386 = vmatpush3.msk.msra.mxu0 %vm340_vm5, %v1632_v30  ;;  %vm709_vm12 = vcmp.eq.s32.totalorder %v708_v10, %v1854_v52  ;;  %vm814_vm5 = vcmp.eq.s32.totalorder %v1854_v52, %v812_v57 }
  0xd1   : > { %1413 = vmatprep.subr.mxu0 %v1608_v2  ;;  %v710_v36 = vsel %vm709_vm12, 1.0, %v1608_v2 }
  0xd2   : > { %v732_v41 = vadd.f32 %v710_v36, %v705_v31 }
  0xd4   : > { %v718_v15 = vpop.permute.xlu1 %717  ;;  %v735_v47 = vadd.f32 %v732_v41, %v731_v42 }
  0xd5   : > { %vm719_vm13 = vcmp.eq.s32.totalorder %v718_v15, %v1854_v52 }
  0xd6   : > { %v720_v37 = vsel %vm719_vm13, 1.0, %v1608_v2  ;;  %vm822_vm13 = vcmask 130048  }
  0xd7   : > { %v733_v43 = vadd.f32 %v720_v37, %v715_v34 }
  0xd9   : > { %v723_v3 = vpop.permute.xlu1 %722 }
  0xda   : > { %vm724_vm14 = vcmp.eq.s32.totalorder %v723_v3, %v1854_v52 }
  0xdb   : > { %v725_v38 = vsel %vm724_vm14, 1.0, %v1608_v2 }
  0xdc   : > { %v734_v44 = vadd.f32 %v730_v39, %v725_v38 }
  0xde   : > { %v736_v48 = vadd.f32 %v734_v44, %v733_v43 }
  0xe0   : > { %v737_v51 = vadd.f32 %v736_v48, %v735_v47 }
 0x118   : > { %v901_v61 = vpop.permute.xlu1 %900  ;;  %v911_v6 = vpop.permute.xlu0 %910 }
 0x119   : > { %vm902_vm8 = vcmp.eq.s32.totalorder %v901_v61, %v1854_v52  ;;  %vm912_vm10 = vcmp.eq.s32.totalorder %v911_v6, %v1854_v52 }
 0x11a   : > { %v903_v15 = vsel %vm902_vm8, 1.0, %v1608_v2 }
 0x11d   : > { %v906_v62 = vpop.permute.xlu1 %905  ;;  %v926_v10 = vpop.permute.xlu0 %925 }
 0x11e   : > { %vm907_vm9 = vcmp.eq.s32.totalorder %v906_v62, %v1854_v52  ;;  %vm927_vm12 = vcmp.eq.s32.totalorder %v926_v10, %v1854_v52 }
 0x11f   : > { %v928_v19 = vsel %vm927_vm12, 1.0, %v1608_v2 }
 0x122   : > { %v916_v63 = vpop.permute.xlu1 %915 }
 0x123   : > { %vm917_vm14 = vcmp.eq.s32.totalorder %v916_v63, %v1854_v52 }
 0x127   : > { %v921_v5 = vpop.permute.xlu1 %920 }
 0x128   : > { %vm922_vm15 = vcmp.eq.s32.totalorder %v921_v5, %v1854_v52 }
 0x129   : > { %v923_v3 = vsel %vm922_vm15, 1.0, %v1608_v2 }
 0x12a   : > { %v941_v34 = vadd.f32 %v928_v19, %v923_v3 }
 0x12d   : > { %v931_v7 = vpop.permute.xlu1 %930 }
 0x132   : > { %v936_v11 = vpop.permute.xlu1 %935 }
 0x170   : > { %v484_v18 = vpop.f32.mrf.mxu1 }
 0x171   : > { %1377 = vmatmul.mubr.msk.f32.vlgmr.msra.gmra.mxu1 %vm531_vm6, %v484_v18  ;;  %v913_v18 = vsel %vm912_vm10, 1.0, %v1608_v2 }
 0x172   : > { %1391 = vmatpush3.msra.mxu1 %v690_v17  ;;  %v1359_v24 = vpop.f32.mrf.mxu1  ;;  %1410 = vmatprep.mubr.msk.f32.mxu1 %vm1617_vm1, %v1608_v2  ;;  %v908_v17 = vsel %vm907_vm9, 1.0, %v1608_v2 }
 0x173   : > { %1392 = vmatprep.subr.mxu1 %v1608_v2  ;;  %v939_v29 = vadd.f32 %v908_v17, %v903_v15 }
 0x174   : > { %1393 = vmatpush3.msra.mxu1 %v689_v23  ;;  %v918_v23 = vsel %vm917_vm14, 1.0, %v1608_v2 }
 0x175   : > { %1394 = vmatprep.subr.mxu1 %v1608_v2  ;;  %v940_v31 = vadd.f32 %v918_v23, %v913_v18 }
 0x176   : > { %1395 = vmatpush3.msra.mxu1 %v688_v25 }
 0x177   : > { %1396 = vmatprep.subr.mxu1 %v1608_v2  ;;  %v943_v37 = vadd.f32 %v940_v31, %v939_v29 }
 0x178   : > { %1397 = vmatpush3.msra.mxu1 %v687_v27 }
 0x179   : > { %1398 = vmatprep.subr.mxu1 %v1608_v2 }
 0x17a   : > { %1399 = vmatpush3.msra.mxu1 %v686_v35 }
 0x17b   : > { %1400 = vmatprep.subr.mxu1 %v1608_v2 }
 0x17c   : > { %1401 = vmatpush3.msra.mxu1 %v685_v40 }
 0x17d   : > { %1402 = vmatprep.subr.mxu1 %v1608_v2 }
 0x17e   : > { %1403 = vmatpush3.msra.mxu1 %v684_v45 }
 0x17f   : > { %1404 = vmatprep.subr.mxu1 %v1608_v2 }
 0x180   : > { %1405 = vmatpush3.msra.mxu1 %v683_v46 }
 0x181   : > { %1406 = vmatprep.subr.mxu1 %v1608_v2 }
 0x182   : > { %1407 = vmatpush3.msra.mxu1 %v682_v49 }
 0x183   : > { %1408 = vmatprep.subr.mxu1 %v1608_v2 }
 0x184   : > { %1409 = vmatpush3.msra.mxu1 %v681_v50 }
 0x185   : > { %1411 = vmatmul.mubr.msk.f32.vlgmr.msra.gmra.mxu1 %vm738_vm2, %v737_v51  ;;  %1241 = vmatprep.subr.msk.mxu1 %vm1042_vm7, %v1632_v30  ;;  %vm932_vm2 = vcmp.eq.s32.totalorder %v931_v7, %v1854_v52 }
 0x186   : > { %1126 = vmatprep.mubr.f32.mxu1 %v1608_v2  ;;  %1079 = vmatpush1.msra.mxu1 %v1608_v2  ;;  %v933_v24 = vsel %vm932_vm2, 1.0, %v1608_v2 }
 0x189   : > { %v330_v53 = vpop.f32.mrf.mxu0 }
 0x18a   : > { %1388 = vmatmul.mubr.msk.f32.vlgmr.msra.gmra.mxu0 %vm606_vm3, %v330_v53  ;;  %vm937_vm3 = vcmp.eq.s32.totalorder %v936_v11, %v1854_v52 }
 0x18b   : > { %v1342_v54 = vpop.f32.mrf.mxu0  ;;  %1417 = vmatprep.mubr.msk.f32.mxu0 %vm1617_vm1, %v1608_v2  ;;  %1414 = vmatpush3.msk.msra.mxu0 %vm816_vm4, %v1632_v30  ;;  %v938_v25 = vsel %vm937_vm3, 1.0, %v1608_v2 }
 0x18c   : > { %1415 = vmatprep.subr.mxu0 %v1608_v2  ;;  %v942_v33 = vadd.f32 %v938_v25, %v933_v24 }
 0x18d   : > { %1416 = vmatpush3.msk.msra.mxu0 %vm814_vm5, %v1632_v30 }
 0x18e   : > { %1420 = vmatprep.subr.mxu0 %v1608_v2  ;;  %v944_v38 = vadd.f32 %v942_v33, %v941_v34 }
 0x231   : > { %v601_v0 = vpop.f32.mrf.mxu1 }
 0x233   : > { %v1378_v1 = vpop.f32.mrf.mxu1 }
 0x245   : > { %v808_v59 = vpop.f32.mrf.mxu1 }
 0x246   : > { %1418 = vmatmul.mubr.msk.f32.vlgmr.msra.gmra.mxu0 %vm822_vm13, %v808_v59 }
 0x247   : > { %1421 = vmatpush3.msk.msra.mxu0 %vm414_vm0, %v1733_v8  ;;  %v1412_v27 = vpop.f32.mrf.mxu1  ;;  %1434 = vmatprep.mubr.msk.f32.mxu0 %vm1617_vm1, %v1608_v2 }
 0x248   : > { %1422 = vmatprep.subr.mxu0 %v1608_v2 }
 0x249   : > { %1423 = vmatpush3.msra.mxu0 %v1741_v9  ;;  %v945_v9 = vadd.f32 %v944_v38, %v943_v37 }
 0x24a   : > { %1424 = vmatprep.subr.mxu0 %v1608_v2  ;;  %v676_v35 = vpop.f32.mrf.mxu0 }
 0x24b   : > { %1425 = vmatpush3.msra.mxu0 %v1747_v12  ;;  %v677_v36 = vadd.f32 %v676_v35, %v601_v0  ;;  %v1025_v12 = vadd.s32 112, %v1876_v4  ;;  %v1020_v4 = vadd.s32 112, %v1906_v32 }
 0x24c   : > { %1426 = vmatprep.subr.mxu0 %v1608_v2  ;;  %v1389_v8 = vpop.f32.mrf.mxu0 }
 0x24d   : > { %1427 = vmatpush3.msra.mxu0 %v1757_v13  ;;  %vm1040_vm0 = vcmp.eq.s32.totalorder %v2042_v58, %v1025_v12  ;;  %v1024_v13 = vadd.s32 112, %v1882_v14  ;;  %vm1029_vm7 = vcmp.eq.s32.totalorder %v1854_v52, %v1020_v4  ;;  %v1019_v14 = vadd.s32 112, %v1859_v55 }
 0x24e   : > { %1428 = vmatprep.subr.mxu0 %v1608_v2  ;;  %1242 = vmatprep.subr.msk.mxu1 %vm1040_vm0, %v1632_v30 }
 0x24f   : > { %1429 = vmatpush3.msra.mxu0 %v1764_v16  ;;  %1081 = vmatpush1.msra.mxu1 %v1608_v2  ;;  %vm1038_vm1 = vcmp.eq.s32.totalorder %v2042_v58, %v1024_v13  ;;  %v1023_v16 = vadd.s32 112, %v1886_v21  ;;  %vm1027_vm8 = vcmp.eq.s32.totalorder %v1854_v52, %v1019_v14 }
 0x250   : > { %1430 = vmatprep.subr.mxu0 %v1608_v2  ;;  %1243 = vmatprep.subr.msk.mxu1 %vm1038_vm1, %v1632_v30 }
 0x251   : > { %1431 = vmatpush3.msra.mxu0 %v1777_v20  ;;  %v1022_v20 = vadd.s32 112, %v1891_v26  ;;  %1083 = vmatpush1.msra.mxu1 %v1608_v2 }
 0x252   : > { %1432 = vmatprep.subr.mxu0 %v1608_v2 }
 0x253   : > { %1433 = vmatpush3.msra.mxu0 %v1788_v22  ;;  %v1021_v22 = vadd.s32 112, %v1897_v28  ;;  %vm1034_vm4 = vcmp.eq.s32.totalorder %v2042_v58, %v1022_v20 }
 0x254   : > { %1435 = vmatmul.mubr.msk.f32.vlgmr.msra.gmra.mxu0 %vm410_vm11, %v945_v9  ;;  %vm1036_vm11 = vcmp.eq.s32.totalorder %v2042_v58, %v1023_v16 }
 0x255   : > { %1244 = vmatprep.subr.msk.mxu1 %vm1036_vm11, %v1632_v30  ;;  %vm1032_vm5 = vcmp.eq.s32.totalorder %v2042_v58, %v1021_v22 }
 0x256   : > { %1085 = vmatpush1.msra.mxu1 %v1608_v2 }
 0x257   : > { %1245 = vmatprep.subr.msk.mxu1 %vm1034_vm4, %v1632_v30 }
 0x258   : > { %1087 = vmatpush1.msra.mxu1 %v1608_v2 }
 0x259   : > { %1246 = vmatprep.subr.msk.mxu1 %vm1032_vm5, %v1632_v30 }
 0x25a   : > { %1089 = vmatpush1.msra.mxu1 %v1608_v2 }
 0x25b   : > { %1090 = vmatprep.subr.mxu1 %v1608_v2 }
 0x25c   : > { %1247 = vmatpush1.msk.msra.mxu1 %vm1029_vm7, %v1632_v30 }
 0x25d   : > { %1092 = vmatprep.subr.mxu1 %v1608_v2 }
 0x25e   : > { %1248 = vmatpush1.msk.msra.mxu1 %vm1027_vm8, %v1632_v30 }
 0x306   : > { %v892_v21 = vpop.f32.mrf.mxu0 }
 0x307   : > { %v897_v26 = vadd.f32 %v892_v21, %v677_v36 }
 0x308   : > { %v1419_v28 = vpop.f32.mrf.mxu0 }
 0x314   : > { %v1015_v32 = vpop.f32.mrf.mxu0 }
 0x315   : > { %1249 = vmatmul.mubr.msk.f32.vlgmr.msra.gmra.mxu1 %vm531_vm6, %v1015_v32 }
 0x316   : > { %v1436_v39 = vpop.f32.mrf.mxu0 }
 0x3d5   : > { %v1128_v55 = vpop.f32.mrf.mxu1 }
 0x3d6   : > { %v1133_v40 = vadd.f32 %v1128_v55, %v897_v26 }
 0x3d7   : > { %v1130_v2 = vpop.f32.mrf.mxu1 }
 0x3d8   : > { %1135 = vst [vmem:[%s188_s27] sm:$0xff] %v1133_v40  ;;  %1136 = vst [vmem:[%s188_s27 + $0x8] sm:$0xff] %v1130_v2 }
 0x3d9   : > { %1557 = shalt.err (!%p1554_p3)
}
 0x3da   : > { %s1558_s10 = scalar_lea.hbm %s2115_s5, 256  ;;  %s1562_s13 = scalar_lea.hbm %s2160_s4, 512 }
 0x3db   : > { %p1559_p4 = scmp.ne.s32.totalorder %s2115_s5, %s1558_s10  ;;  %p1563_p9 = scmp.lt.s32.totalorder %s2115_s5, %s2160_s4 }
 0x3dc   : > { %p1564_p10 = scmp.lt.s32.totalorder %s1562_s13, %s1558_s10 }
 0x3dd   : > { %p1560_p7 = pnand %p1559_p4, %p1705_p5 }
 0x3de   : > { %p1565_p11 = por %p1564_p10, %p1563_p9 }
 0x3df   : > { %p1561_p8 = pneg %p1560_p7 }
 0x3e1   : > { %p1566_p12 = pnand %p1565_p11, %p1561_p8 }
 0x3e3   : > { %1569 = shalt.err (!%p1566_p12)
}
 0x3e4   : > { %1437 = dma.vmem_to_hbm [thread:$0]  (%p1705_p5), %s2117_s28, 256, %s2115_s5, %s1138_s6  }
 0x3e5 PF: > { %p1443_p13 = scmp.ge.s32.totalorder %s1604_s18, 2  ;;  %s1164_s22 = sand.u32 1, %s1592_s15  }
 0x3e6   : > { %s1165_s23 = scalar_lea.sflag [#allocation3], %s1164_s22 }
 0x3e7   : > { %p1440_p0 = pnand %p1443_p13, %p1709_p6 }
 0x3e9   : > { %p1441_p1 = pneg %p1440_p0 }
 0x3eb   : > { %1587 = dma.done.wait (%p1441_p1), %s1165_s23, 256  }
 0x3ec   : > { %1589 = vsyncadd (%p1441_p1), %s1165_s23, 4294967040  ;;  %p14_p2 = scmp.ge.s32.totalorder %s1692_s21, 4   ;;  %s2163_s15 = smov %s1596_s16 }
 0x3ed   : > { %s2164_s16 = smov %s1600_s17  ;;  %s2165_s17 = smov %s1703_s24 }
 0x3ee   : > { %s2166_s18 = smov %s1692_s21  ;;  %16 = sbr.rel (!%p14_p2) target bundleno = 3 (0x3), region = 71 }
 0x3f3   :  { %1170 = vsyncpa [#allocation3], 1 }
 0x3f4   :  { %1172 = vsyncpa [#allocation3 + $0x1], 1 }

</bundles_post_ra>
